<compile_context>
chip_gen: v6e
topology: v6e:2x2x1
jax: 0.10.0
libtpu: 0.0.40
codegen_flags: <defaults>
</compile_context>

<pallas_src>
import functools

import jax
import jax.numpy as jnp
from jax.experimental import pallas as pl
from jax.experimental.pallas import tpu as pltpu


_TILE_N = 256   # samples per grid step when N is large (multiple of 128; 4096 element rows)


# ---------------------------------------------------------------------------
# Fused kernel: feature extractor + set-sum + InvLinear adder + head MLP
# ---------------------------------------------------------------------------
def _fused_kernel(x1_ref, x2_ref,
                  fw1_ref, fb1_ref, fw2_ref, fb2_ref,
                  fw3_ref, fb3_ref, fw4_ref, fb4_ref,
                  beta_ref, beta_b_ref,
                  w1y_ref, w1x_ref, mb1_ref,
                  mw2_ref, mb2_ref, mw3_ref, mb3_ref, mw4_ref, mb4_ref,
                  out_ref, *, tile_n, n_sets, set_size):
    f32, bf16 = jnp.float32, jnp.bfloat16

    def dense(h, w_ref, b_ref):
        # bf16 operands on the MXU, f32 accumulation, f32 bias.
        return jnp.dot(h.astype(bf16), w_ref[...], preferred_element_type=f32) + b_ref[...]

    # ---- per-element feature extractor: F -> 32 -> 128 -> 64 -> 16 ----
    h = x1_ref[...]                                            # (tile_n*S*M, F) bf16
    h = jnp.maximum(dense(h, fw1_ref, fb1_ref), 0.0)
    h = jnp.maximum(dense(h, fw2_ref, fb2_ref), 0.0)
    # Dropout(p=0.7): identity at inference.
    h = jnp.maximum(dense(h, fw3_ref, fb3_ref), 0.0)
    h = jnp.maximum(dense(h, fw4_ref, fb4_ref), 0.0)           # (tile_n*S*M, 16) f32

    # ---- DeepSets 'sum' over the M elements of each set (sublane/XLU reduce,
    #      replaces the old dense pooling matmul) ----
    pooled = h.reshape(tile_n, n_sets, set_size, h.shape[-1]).sum(axis=2)  # (tile_n, 2, 16)

    # ---- InvLinear adder: per-set scalar = sum(h) @ beta + bias ----
    bias0 = beta_b_ref[...]                                    # (1, 1) f32
    y0 = jnp.dot(pooled[:, 0, :].astype(bf16), beta_ref[...],
                 preferred_element_type=f32) + bias0           # (tile_n, 1)
    y1 = jnp.dot(pooled[:, 1, :].astype(bf16), beta_ref[...],
                 preferred_element_type=f32) + bias0           # (tile_n, 1)

    # ---- head MLP; concat([y0, y1, X2]) folded into a split first layer ----
    w1y = w1y_ref[...].astype(f32)                             # (2, 128)
    h = (y0 * w1y[0:1, :] + y1 * w1y[1:2, :]
         + jnp.dot(x2_ref[...], w1x_ref[...], preferred_element_type=f32)
         + mb1_ref[...])
    h = jnp.maximum(h, 0.0)                                    # (tile_n, 128)
    h = jnp.maximum(dense(h, mw2_ref, mb2_ref), 0.0)           # (tile_n, 64)
    # Dropout(p=0.7): identity at inference.
    h = jnp.maximum(dense(h, mw3_ref, mb3_ref), 0.0)           # (tile_n, 32)
    h = jnp.maximum(dense(h, mw4_ref, mb4_ref), 0.0)           # (tile_n, 1)
    out_ref[...] = h


_WEIGHT_KEYS = ("fw1", "fb1", "fw2", "fb2", "fw3", "fb3", "fw4", "fb4",
                "beta", "beta_b", "w1y", "w1x", "mb1",
                "mw2", "mb2", "mw3", "mb3", "mw4", "mb4")


def _round_up(x, m):
    return -(-x // m) * m


@jax.jit
def multiset_net_forward(X1, X2, kparams):
    """X1: (N, 2, M, F) f32, X2: (N, n_subpix) f32 -> (N, 1) f32 (eval mode)."""
    N, S, M, F = X1.shape
    n_subpix = X2.shape[1]
    assert S == 2, "head input width n_subpix + 2 implies exactly two sets"

    # Batch tile: whole (8-row padded) batch when small, else a lane-aligned 256-sample tile.
    if N <= _TILE_N:
        tn = max(8, _round_up(N, 8))
    else:
        tn = _TILE_N
    n_pad = _round_up(N, tn)
    grid_n = n_pad // tn

    x1, x2 = X1, X2
    if n_pad != N:
        x1 = jnp.pad(x1, ((0, n_pad - N), (0, 0), (0, 0), (0, 0)))
        x2 = jnp.pad(x2, ((0, n_pad - N), (0, 0)))
    x1_flat = x1.reshape(n_pad * S * M, F).astype(jnp.bfloat16)
    x2_bf = x2.astype(jnp.bfloat16)

    rows = tn * S * M                       # element rows (MXU LHS rows) per grid step

    def resident(a):                         # full weight, constant block index -> no re-DMA
        return pl.BlockSpec(a.shape, lambda i: (0, 0))

    weights = [kparams[k] for k in _WEIGHT_KEYS]
    in_specs = ([pl.BlockSpec((rows, F), lambda i: (i, 0)),
                 pl.BlockSpec((tn, n_subpix), lambda i: (i, 0))]
                + [resident(w) for w in weights])

    kernel = functools.partial(_fused_kernel, tile_n=tn, n_sets=S, set_size=M)
    out = pl.pallas_call(
        kernel,
        grid=(grid_n,),
        in_specs=in_specs,
        # (tn, 1) block == full last dim; total output traffic post-fusion is only N*4 bytes.
        out_specs=pl.BlockSpec((tn, 1), lambda i: (i, 0)),
        out_shape=jax.ShapeDtypeStruct((n_pad, 1), jnp.float32),
        compiler_params=pltpu.CompilerParams(
            dimension_semantics=("parallel",)),
    )(x1_flat, x2_bf, *weights)
    return out[:N]


# ---------------------------------------------------------------------------
# Parameters (PyTorch nn.Linear-style uniform init; f32 master copy)
# ---------------------------------------------------------------------------
def make_params(key, n_features=8, n_output=3, n_subpix=64):
    def linear(k, fan_in, fan_out):
        kw, kb = jax.random.split(k)
        bound = 1.0 / float(fan_in) ** 0.5
        w = jax.random.uniform(kw, (fan_in, fan_out), jnp.float32, -bound, bound)
        b = jax.random.uniform(kb, (1, fan_out), jnp.float32, -bound, bound)
        return w, b

    keys = jax.random.split(key, 9)
    p = {}
    p["fw1"], p["fb1"] = linear(keys[0], n_features, 32)
    p["fw2"], p["fb2"] = linear(keys[1], 32, 128)
    p["fw3"], p["fb3"] = linear(keys[2], 128, 64)
    p["fw4"], p["fb4"] = linear(keys[3], 64, 16)
    p["beta"], p["beta_b"] = linear(keys[4], 16, 1)            # InvLinear(16, 1, bias=True)
    p["mw1"], p["mb1"] = linear(keys[5], n_subpix + 2, 128)
    p["mw2"], p["mb2"] = linear(keys[6], 128, 64)
    p["mw3"], p["mb3"] = linear(keys[7], 64, 32)
    p["mw4"], p["mb4"] = linear(keys[8], 32, 1)
    return p


def prepare_kernel_params(p):
    """bf16 weights (MXU-native on v5e/v6e/v7x), f32 biases; head W1 split into the
    2 rows that multiply the set scalars and the n_subpix rows that multiply X2."""
    bf = jnp.bfloat16
    return {
        "fw1": p["fw1"].astype(bf), "fb1": p["fb1"],
        "fw2": p["fw2"].astype(bf), "fb2": p["fb2"],
        "fw3": p["fw3"].astype(bf), "fb3": p["fb3"],
        "fw4": p["fw4"].astype(bf), "fb4": p["fb4"],
        "beta": p["beta"].astype(bf), "beta_b": p["beta_b"],
        "w1y": p["mw1"][:2, :].astype(bf),
        "w1x": p["mw1"][2:, :].astype(bf),
        "mb1": p["mb1"],
        "mw2": p["mw2"].astype(bf), "mb2": p["mb2"],
        "mw3": p["mw3"].astype(bf), "mb3": p["mb3"],
        "mw4": p["mw4"].astype(bf), "mb4": p["mb4"],
    }


# ---------------------------------------------------------------------------
# Pure-JAX reference (eval mode: dropout = identity, mask = None), using the same
# bf16-weights / f32-accumulation scheme as the kernel.
# ---------------------------------------------------------------------------
def reference_forward(X1, X2, kp):
    f32, bf = jnp.float32, jnp.bfloat16

    def dense(h, w, b):
        return jnp.dot(h.astype(bf), w, preferred_element_type=f32) + b

    h = X1.astype(bf)
    h = jnp.maximum(dense(h, kp["fw1"], kp["fb1"]), 0.0)
    h = jnp.maximum(dense(h, kp["fw2"], kp["fb2"]), 0.0)
    h = jnp.maximum(dense(h, kp["fw3"], kp["fb3"]), 0.0)
    h = jnp.maximum(dense(h, kp["fw4"], kp["fb4"]), 0.0)        # (N, S, M, 16)
    pooled = h.sum(axis=2)                                      # (N, S, 16)  DeepSets sum
    y = jnp.dot(pooled.astype(bf), kp["beta"],
                preferred_element_type=f32) + kp["beta_b"]      # (N, S, 1)   InvLinear
    y0, y1 = y[:, 0, :], y[:, 1, :]                             # concat([y, X2]) split form
    w1y = kp["w1y"].astype(f32)
    h = (y0 * w1y[0:1, :] + y1 * w1y[1:2, :]
         + jnp.dot(X2.astype(bf), kp["w1x"], preferred_element_type=f32)
         + kp["mb1"])
    h = jnp.maximum(h, 0.0)
    h = jnp.maximum(dense(h, kp["mw2"], kp["mb2"]), 0.0)
    h = jnp.maximum(dense(h, kp["mw3"], kp["mb3"]), 0.0)
    h = jnp.maximum(dense(h, kp["mw4"], kp["mb4"]), 0.0)
    return h                                                    # (N, 1)


if __name__ == "__main__":
    key = jax.random.PRNGKey(0)
    k_p, k_x1, k_x2, k_y1, k_y2 = jax.random.split(key, 5)

    N, S, M, F, n_subpix = 2, 2, 8, 8, 64
    params = make_params(k_p, n_features=F, n_subpix=n_subpix)
    kparams = prepare_kernel_params(params)

    # Small-shape run (single grid step).
    X1 = jax.random.normal(k_x1, (N, S, M, F), jnp.float32)
    X2 = jax.random.normal(k_x2, (N, n_subpix), jnp.float32)
    out = jax.block_until_ready(multiset_net_forward(X1, X2, kparams))
    ref = reference_forward(X1, X2, kparams)
    assert out.shape == (N, 1), out.shape
    assert jnp.allclose(out, ref, rtol=1e-2, atol=1e-2), (out, ref)

    # Larger batch exercising the tiled grid (grid=(2,), 256-sample tiles) and padding.
    N_big = 300
    X1b = jax.random.normal(k_y1, (N_big, S, M, F), jnp.float32)
    X2b = jax.random.normal(k_y2, (N_big, n_subpix), jnp.float32)
    out_b = jax.block_until_ready(multiset_net_forward(X1b, X2b, kparams))
    ref_b = reference_forward(X1b, X2b, kparams)
    assert out_b.shape == (N_big, 1), out_b.shape
    assert jnp.allclose(out_b, ref_b, rtol=1e-2, atol=1e-2), \
        float(jnp.max(jnp.abs(out_b - ref_b)))

    print("KERNEL_OK")
</pallas_src>

<mosaic_0001>
module attributes {stable_mosaic.version = 11 : i64} {
  func.func @_fused_kernel(%arg0: i32, %arg1: memref<128x8xbf16, #tpu.memory_space<vmem>>, %arg2: memref<8x64xbf16, #tpu.memory_space<vmem>>, %arg3: memref<8x32xbf16, #tpu.memory_space<vmem>>, %arg4: memref<1x32xf32, #tpu.memory_space<vmem>>, %arg5: memref<32x128xbf16, #tpu.memory_space<vmem>>, %arg6: memref<1x128xf32, #tpu.memory_space<vmem>>, %arg7: memref<128x64xbf16, #tpu.memory_space<vmem>>, %arg8: memref<1x64xf32, #tpu.memory_space<vmem>>, %arg9: memref<64x16xbf16, #tpu.memory_space<vmem>>, %arg10: memref<1x16xf32, #tpu.memory_space<vmem>>, %arg11: memref<16x1xbf16, #tpu.memory_space<vmem>>, %arg12: memref<1x1xf32, #tpu.memory_space<vmem>>, %arg13: memref<2x128xbf16, #tpu.memory_space<vmem>>, %arg14: memref<64x128xbf16, #tpu.memory_space<vmem>>, %arg15: memref<1x128xf32, #tpu.memory_space<vmem>>, %arg16: memref<128x64xbf16, #tpu.memory_space<vmem>>, %arg17: memref<1x64xf32, #tpu.memory_space<vmem>>, %arg18: memref<64x32xbf16, #tpu.memory_space<vmem>>, %arg19: memref<1x32xf32, #tpu.memory_space<vmem>>, %arg20: memref<32x1xbf16, #tpu.memory_space<vmem>>, %arg21: memref<1x1xf32, #tpu.memory_space<vmem>>, %arg22: memref<8x1xf32, #tpu.memory_space<vmem>>) attributes {dimension_semantics = [#tpu.dimension_semantics<parallel>], iteration_bounds = array<i64: 1>, scalar_prefetch = 0 : i64, scratch_operands = 0 : i64, tpu.core_type = #tpu.core_type<tc>, window_params = [{transform_indices = @transform_0, window_bounds = array<i64: 128, 8>}, {transform_indices = @transform_1, window_bounds = array<i64: 8, 64>}, {pipeline_mode = #tpu.pipeline_mode<synchronous>, transform_indices = @transform_2, window_bounds = array<i64: 8, 32>}, {pipeline_mode = #tpu.pipeline_mode<synchronous>, transform_indices = @transform_3, window_bounds = array<i64: 1, 32>}, {pipeline_mode = #tpu.pipeline_mode<synchronous>, transform_indices = @transform_4, window_bounds = array<i64: 32, 128>}, {pipeline_mode = #tpu.pipeline_mode<synchronous>, transform_indices = @transform_5, window_bounds = array<i64: 1, 128>}, {pipeline_mode = #tpu.pipeline_mode<synchronous>, transform_indices = @transform_6, window_bounds = array<i64: 128, 64>}, {pipeline_mode = #tpu.pipeline_mode<synchronous>, transform_indices = @transform_7, window_bounds = array<i64: 1, 64>}, {pipeline_mode = #tpu.pipeline_mode<synchronous>, transform_indices = @transform_8, window_bounds = array<i64: 64, 16>}, {pipeline_mode = #tpu.pipeline_mode<synchronous>, transform_indices = @transform_9, window_bounds = array<i64: 1, 16>}, {pipeline_mode = #tpu.pipeline_mode<synchronous>, transform_indices = @transform_10, window_bounds = array<i64: 16, 1>}, {pipeline_mode = #tpu.pipeline_mode<synchronous>, transform_indices = @transform_11, window_bounds = array<i64: 1, 1>}, {pipeline_mode = #tpu.pipeline_mode<synchronous>, transform_indices = @transform_12, window_bounds = array<i64: 2, 128>}, {pipeline_mode = #tpu.pipeline_mode<synchronous>, transform_indices = @transform_13, window_bounds = array<i64: 64, 128>}, {pipeline_mode = #tpu.pipeline_mode<synchronous>, transform_indices = @transform_14, window_bounds = array<i64: 1, 128>}, {pipeline_mode = #tpu.pipeline_mode<synchronous>, transform_indices = @transform_15, window_bounds = array<i64: 128, 64>}, {pipeline_mode = #tpu.pipeline_mode<synchronous>, transform_indices = @transform_16, window_bounds = array<i64: 1, 64>}, {pipeline_mode = #tpu.pipeline_mode<synchronous>, transform_indices = @transform_17, window_bounds = array<i64: 64, 32>}, {pipeline_mode = #tpu.pipeline_mode<synchronous>, transform_indices = @transform_18, window_bounds = array<i64: 1, 32>}, {pipeline_mode = #tpu.pipeline_mode<synchronous>, transform_indices = @transform_19, window_bounds = array<i64: 32, 1>}, {pipeline_mode = #tpu.pipeline_mode<synchronous>, transform_indices = @transform_20, window_bounds = array<i64: 1, 1>}, {transform_indices = @transform_21, window_bounds = array<i64: 8, 1>}]} {
    %c0 = arith.constant 0 : index
    %c0_0 = arith.constant 0 : index
    %0 = vector.load %arg1[%c0, %c0_0] : memref<128x8xbf16, #tpu.memory_space<vmem>>, vector<128x8xbf16>
    %c0_1 = arith.constant 0 : index
    %c0_2 = arith.constant 0 : index
    %1 = vector.load %arg3[%c0_1, %c0_2] : memref<8x32xbf16, #tpu.memory_space<vmem>>, vector<8x32xbf16>
    %cst = arith.constant dense<0.000000e+00> : vector<128x32xf32>
    %2 = tpu.matmul %0, %1, %cst {dimension_numbers = #tpu.dot_dimension_numbers<[1], [0], [0], [1], [0, 0, 1, 1], [], []>} : vector<128x8xbf16>, vector<8x32xbf16>, vector<128x32xf32> -> vector<128x32xf32>
    %c0_3 = arith.constant 0 : index
    %c0_4 = arith.constant 0 : index
    %3 = vector.load %arg4[%c0_3, %c0_4] : memref<1x32xf32, #tpu.memory_space<vmem>>, vector<1x32xf32>
    %4 = vector.broadcast %3 : vector<1x32xf32> to vector<128x32xf32>
    %5 = arith.addf %2, %4 : vector<128x32xf32>
    %cst_5 = arith.constant 0.000000e+00 : f32
    %6 = vector.broadcast %cst_5 : f32 to vector<128x32xf32>
    %7 = arith.maximumf %5, %6 : vector<128x32xf32>
    %8 = arith.truncf %7 : vector<128x32xf32> to vector<128x32xbf16>
    %c0_6 = arith.constant 0 : index
    %c0_7 = arith.constant 0 : index
    %9 = vector.load %arg5[%c0_6, %c0_7] : memref<32x128xbf16, #tpu.memory_space<vmem>>, vector<32x128xbf16>
    %cst_8 = arith.constant dense<0.000000e+00> : vector<128x128xf32>
    %10 = tpu.matmul %8, %9, %cst_8 {dimension_numbers = #tpu.dot_dimension_numbers<[1], [0], [0], [1], [0, 0, 1, 1], [], []>} : vector<128x32xbf16>, vector<32x128xbf16>, vector<128x128xf32> -> vector<128x128xf32>
    %c0_9 = arith.constant 0 : index
    %c0_10 = arith.constant 0 : index
    %11 = vector.load %arg6[%c0_9, %c0_10] : memref<1x128xf32, #tpu.memory_space<vmem>>, vector<1x128xf32>
    %12 = vector.broadcast %11 : vector<1x128xf32> to vector<128x128xf32>
    %13 = arith.addf %10, %12 : vector<128x128xf32>
    %cst_11 = arith.constant 0.000000e+00 : f32
    %14 = vector.broadcast %cst_11 : f32 to vector<128x128xf32>
    %15 = arith.maximumf %13, %14 : vector<128x128xf32>
    %16 = arith.truncf %15 : vector<128x128xf32> to vector<128x128xbf16>
    %c0_12 = arith.constant 0 : index
    %c0_13 = arith.constant 0 : index
    %17 = vector.load %arg7[%c0_12, %c0_13] : memref<128x64xbf16, #tpu.memory_space<vmem>>, vector<128x64xbf16>
    %cst_14 = arith.constant dense<0.000000e+00> : vector<128x64xf32>
    %18 = tpu.matmul %16, %17, %cst_14 {dimension_numbers = #tpu.dot_dimension_numbers<[1], [0], [0], [1], [0, 0, 1, 1], [], []>} : vector<128x128xbf16>, vector<128x64xbf16>, vector<128x64xf32> -> vector<128x64xf32>
    %c0_15 = arith.constant 0 : index
    %c0_16 = arith.constant 0 : index
    %19 = vector.load %arg8[%c0_15, %c0_16] : memref<1x64xf32, #tpu.memory_space<vmem>>, vector<1x64xf32>
    %20 = vector.broadcast %19 : vector<1x64xf32> to vector<128x64xf32>
    %21 = arith.addf %18, %20 : vector<128x64xf32>
    %cst_17 = arith.constant 0.000000e+00 : f32
    %22 = vector.broadcast %cst_17 : f32 to vector<128x64xf32>
    %23 = arith.maximumf %21, %22 : vector<128x64xf32>
    %24 = arith.truncf %23 : vector<128x64xf32> to vector<128x64xbf16>
    %c0_18 = arith.constant 0 : index
    %c0_19 = arith.constant 0 : index
    %25 = vector.load %arg9[%c0_18, %c0_19] : memref<64x16xbf16, #tpu.memory_space<vmem>>, vector<64x16xbf16>
    %cst_20 = arith.constant dense<0.000000e+00> : vector<128x16xf32>
    %26 = tpu.matmul %24, %25, %cst_20 {dimension_numbers = #tpu.dot_dimension_numbers<[1], [0], [0], [1], [0, 0, 1, 1], [], []>} : vector<128x64xbf16>, vector<64x16xbf16>, vector<128x16xf32> -> vector<128x16xf32>
    %c0_21 = arith.constant 0 : index
    %c0_22 = arith.constant 0 : index
    %27 = vector.load %arg10[%c0_21, %c0_22] : memref<1x16xf32, #tpu.memory_space<vmem>>, vector<1x16xf32>
    %28 = vector.broadcast %27 : vector<1x16xf32> to vector<128x16xf32>
    %29 = arith.addf %26, %28 : vector<128x16xf32>
    %cst_23 = arith.constant 0.000000e+00 : f32
    %30 = vector.broadcast %cst_23 : f32 to vector<128x16xf32>
    %31 = arith.maximumf %29, %30 : vector<128x16xf32>
    %32 = vector.shape_cast %31 : vector<128x16xf32> to vector<8x2x8x16xf32>
    %cst_24 = arith.constant dense<0.000000e+00> : vector<8x2x16xf32>
    %33 = vector.multi_reduction <add>, %32, %cst_24 [2] : vector<8x2x8x16xf32> to vector<8x2x16xf32>
    %c0_25 = arith.constant 0 : index
    %c0_26 = arith.constant 0 : index
    %34 = vector.load %arg12[%c0_25, %c0_26] : memref<1x1xf32, #tpu.memory_space<vmem>>, vector<1x1xf32>
    %35 = vector.extract_strided_slice %33 {offsets = [0, 0, 0], sizes = [8, 1, 16], strides = [1, 1, 1]} : vector<8x2x16xf32> to vector<8x1x16xf32>
    %36 = vector.shape_cast %35 : vector<8x1x16xf32> to vector<8x16xf32>
    %37 = arith.truncf %36 : vector<8x16xf32> to vector<8x16xbf16>
    %c0_27 = arith.constant 0 : index
    %c0_28 = arith.constant 0 : index
    %38 = vector.load %arg11[%c0_27, %c0_28] : memref<16x1xbf16, #tpu.memory_space<vmem>>, vector<16x1xbf16>
    %cst_29 = arith.constant dense<0.000000e+00> : vector<8x1xf32>
    %39 = tpu.matmul %37, %38, %cst_29 {dimension_numbers = #tpu.dot_dimension_numbers<[1], [0], [0], [1], [0, 0, 1, 1], [], []>} : vector<8x16xbf16>, vector<16x1xbf16>, vector<8x1xf32> -> vector<8x1xf32>
    %40 = vector.broadcast %34 : vector<1x1xf32> to vector<8x1xf32>
    %41 = arith.addf %39, %40 : vector<8x1xf32>
    %42 = vector.extract_strided_slice %33 {offsets = [0, 1, 0], sizes = [8, 1, 16], strides = [1, 1, 1]} : vector<8x2x16xf32> to vector<8x1x16xf32>
    %43 = vector.shape_cast %42 : vector<8x1x16xf32> to vector<8x16xf32>
    %44 = arith.truncf %43 : vector<8x16xf32> to vector<8x16xbf16>
    %c0_30 = arith.constant 0 : index
    %c0_31 = arith.constant 0 : index
    %45 = vector.load %arg11[%c0_30, %c0_31] : memref<16x1xbf16, #tpu.memory_space<vmem>>, vector<16x1xbf16>
    %cst_32 = arith.constant dense<0.000000e+00> : vector<8x1xf32>
    %46 = tpu.matmul %44, %45, %cst_32 {dimension_numbers = #tpu.dot_dimension_numbers<[1], [0], [0], [1], [0, 0, 1, 1], [], []>} : vector<8x16xbf16>, vector<16x1xbf16>, vector<8x1xf32> -> vector<8x1xf32>
    %47 = vector.broadcast %34 : vector<1x1xf32> to vector<8x1xf32>
    %48 = arith.addf %46, %47 : vector<8x1xf32>
    %c0_33 = arith.constant 0 : index
    %c0_34 = arith.constant 0 : index
    %49 = vector.load %arg13[%c0_33, %c0_34] : memref<2x128xbf16, #tpu.memory_space<vmem>>, vector<2x128xbf16>
    %50 = arith.extf %49 : vector<2x128xbf16> to vector<2x128xf32>
    %51 = vector.extract_strided_slice %50 {offsets = [0, 0], sizes = [1, 128], strides = [1, 1]} : vector<2x128xf32> to vector<1x128xf32>
    %52 = vector.broadcast %41 : vector<8x1xf32> to vector<8x128xf32>
    %53 = vector.broadcast %51 : vector<1x128xf32> to vector<8x128xf32>
    %54 = arith.mulf %52, %53 : vector<8x128xf32>
    %55 = vector.extract_strided_slice %50 {offsets = [1, 0], sizes = [1, 128], strides = [1, 1]} : vector<2x128xf32> to vector<1x128xf32>
    %56 = vector.broadcast %48 : vector<8x1xf32> to vector<8x128xf32>
    %57 = vector.broadcast %55 : vector<1x128xf32> to vector<8x128xf32>
    %58 = arith.mulf %56, %57 : vector<8x128xf32>
    %59 = arith.addf %54, %58 : vector<8x128xf32>
    %c0_35 = arith.constant 0 : index
    %c0_36 = arith.constant 0 : index
    %60 = vector.load %arg2[%c0_35, %c0_36] : memref<8x64xbf16, #tpu.memory_space<vmem>>, vector<8x64xbf16>
    %c0_37 = arith.constant 0 : index
    %c0_38 = arith.constant 0 : index
    %61 = vector.load %arg14[%c0_37, %c0_38] : memref<64x128xbf16, #tpu.memory_space<vmem>>, vector<64x128xbf16>
    %cst_39 = arith.constant dense<0.000000e+00> : vector<8x128xf32>
    %62 = tpu.matmul %60, %61, %cst_39 {dimension_numbers = #tpu.dot_dimension_numbers<[1], [0], [0], [1], [0, 0, 1, 1], [], []>} : vector<8x64xbf16>, vector<64x128xbf16>, vector<8x128xf32> -> vector<8x128xf32>
    %63 = arith.addf %59, %62 : vector<8x128xf32>
    %c0_40 = arith.constant 0 : index
    %c0_41 = arith.constant 0 : index
    %64 = vector.load %arg15[%c0_40, %c0_41] : memref<1x128xf32, #tpu.memory_space<vmem>>, vector<1x128xf32>
    %65 = vector.broadcast %64 : vector<1x128xf32> to vector<8x128xf32>
    %66 = arith.addf %63, %65 : vector<8x128xf32>
    %cst_42 = arith.constant 0.000000e+00 : f32
    %67 = vector.broadcast %cst_42 : f32 to vector<8x128xf32>
    %68 = arith.maximumf %66, %67 : vector<8x128xf32>
    %69 = arith.truncf %68 : vector<8x128xf32> to vector<8x128xbf16>
    %c0_43 = arith.constant 0 : index
    %c0_44 = arith.constant 0 : index
    %70 = vector.load %arg16[%c0_43, %c0_44] : memref<128x64xbf16, #tpu.memory_space<vmem>>, vector<128x64xbf16>
    %cst_45 = arith.constant dense<0.000000e+00> : vector<8x64xf32>
    %71 = tpu.matmul %69, %70, %cst_45 {dimension_numbers = #tpu.dot_dimension_numbers<[1], [0], [0], [1], [0, 0, 1, 1], [], []>} : vector<8x128xbf16>, vector<128x64xbf16>, vector<8x64xf32> -> vector<8x64xf32>
    %c0_46 = arith.constant 0 : index
    %c0_47 = arith.constant 0 : index
    %72 = vector.load %arg17[%c0_46, %c0_47] : memref<1x64xf32, #tpu.memory_space<vmem>>, vector<1x64xf32>
    %73 = vector.broadcast %72 : vector<1x64xf32> to vector<8x64xf32>
    %74 = arith.addf %71, %73 : vector<8x64xf32>
    %cst_48 = arith.constant 0.000000e+00 : f32
    %75 = vector.broadcast %cst_48 : f32 to vector<8x64xf32>
    %76 = arith.maximumf %74, %75 : vector<8x64xf32>
    %77 = arith.truncf %76 : vector<8x64xf32> to vector<8x64xbf16>
    %c0_49 = arith.constant 0 : index
    %c0_50 = arith.constant 0 : index
    %78 = vector.load %arg18[%c0_49, %c0_50] : memref<64x32xbf16, #tpu.memory_space<vmem>>, vector<64x32xbf16>
    %cst_51 = arith.constant dense<0.000000e+00> : vector<8x32xf32>
    %79 = tpu.matmul %77, %78, %cst_51 {dimension_numbers = #tpu.dot_dimension_numbers<[1], [0], [0], [1], [0, 0, 1, 1], [], []>} : vector<8x64xbf16>, vector<64x32xbf16>, vector<8x32xf32> -> vector<8x32xf32>
    %c0_52 = arith.constant 0 : index
    %c0_53 = arith.constant 0 : index
    %80 = vector.load %arg19[%c0_52, %c0_53] : memref<1x32xf32, #tpu.memory_space<vmem>>, vector<1x32xf32>
    %81 = vector.broadcast %80 : vector<1x32xf32> to vector<8x32xf32>
    %82 = arith.addf %79, %81 : vector<8x32xf32>
    %cst_54 = arith.constant 0.000000e+00 : f32
    %83 = vector.broadcast %cst_54 : f32 to vector<8x32xf32>
    %84 = arith.maximumf %82, %83 : vector<8x32xf32>
    %85 = arith.truncf %84 : vector<8x32xf32> to vector<8x32xbf16>
    %c0_55 = arith.constant 0 : index
    %c0_56 = arith.constant 0 : index
    %86 = vector.load %arg20[%c0_55, %c0_56] : memref<32x1xbf16, #tpu.memory_space<vmem>>, vector<32x1xbf16>
    %cst_57 = arith.constant dense<0.000000e+00> : vector<8x1xf32>
    %87 = tpu.matmul %85, %86, %cst_57 {dimension_numbers = #tpu.dot_dimension_numbers<[1], [0], [0], [1], [0, 0, 1, 1], [], []>} : vector<8x32xbf16>, vector<32x1xbf16>, vector<8x1xf32> -> vector<8x1xf32>
    %c0_58 = arith.constant 0 : index
    %c0_59 = arith.constant 0 : index
    %88 = vector.load %arg21[%c0_58, %c0_59] : memref<1x1xf32, #tpu.memory_space<vmem>>, vector<1x1xf32>
    %89 = vector.broadcast %88 : vector<1x1xf32> to vector<8x1xf32>
    %90 = arith.addf %87, %89 : vector<8x1xf32>
    %cst_60 = arith.constant 0.000000e+00 : f32
    %91 = vector.broadcast %cst_60 : f32 to vector<8x1xf32>
    %92 = arith.maximumf %90, %91 : vector<8x1xf32>
    %c0_61 = arith.constant 0 : index
    %c0_62 = arith.constant 0 : index
    %93 = vector.load %arg22[%c0_61, %c0_62] : memref<8x1xf32, #tpu.memory_space<vmem>>, vector<8x1xf32>
    tpu.vector_store %arg22[%c0_61, %c0_62], %92 {strides = array<i32>} : memref<8x1xf32, #tpu.memory_space<vmem>>, vector<8x1xf32>,
    return
  }
  func.func @transform_0(%arg0: i32) -> (i32, i32) {
    %c0_i32 = arith.constant 0 : i32
    %c0_i32_0 = arith.constant 0 : i32
    return %arg0, %c0_i32 : i32, i32
  }
  func.func @transform_1(%arg0: i32) -> (i32, i32) {
    %c0_i32 = arith.constant 0 : i32
    %c0_i32_0 = arith.constant 0 : i32
    return %arg0, %c0_i32 : i32, i32
  }
  func.func @transform_2(%arg0: i32) -> (i32, i32) {
    %c0_i32 = arith.constant 0 : i32
    %c0_i32_0 = arith.constant 0 : i32
    %c0_i32_1 = arith.constant 0 : i32
    return %c0_i32, %c0_i32_0 : i32, i32
  }
  func.func @transform_3(%arg0: i32) -> (i32, i32) {
    %c0_i32 = arith.constant 0 : i32
    %c0_i32_0 = arith.constant 0 : i32
    %c0_i32_1 = arith.constant 0 : i32
    return %c0_i32, %c0_i32_0 : i32, i32
  }
  func.func @transform_4(%arg0: i32) -> (i32, i32) {
    %c0_i32 = arith.constant 0 : i32
    %c0_i32_0 = arith.constant 0 : i32
    %c0_i32_1 = arith.constant 0 : i32
    return %c0_i32, %c0_i32_0 : i32, i32
  }
  func.func @transform_5(%arg0: i32) -> (i32, i32) {
    %c0_i32 = arith.constant 0 : i32
    %c0_i32_0 = arith.constant 0 : i32
    %c0_i32_1 = arith.constant 0 : i32
    return %c0_i32, %c0_i32_0 : i32, i32
  }
  func.func @transform_6(%arg0: i32) -> (i32, i32) {
    %c0_i32 = arith.constant 0 : i32
    %c0_i32_0 = arith.constant 0 : i32
    %c0_i32_1 = arith.constant 0 : i32
    return %c0_i32, %c0_i32_0 : i32, i32
  }
  func.func @transform_7(%arg0: i32) -> (i32, i32) {
    %c0_i32 = arith.constant 0 : i32
    %c0_i32_0 = arith.constant 0 : i32
    %c0_i32_1 = arith.constant 0 : i32
    return %c0_i32, %c0_i32_0 : i32, i32
  }
  func.func @transform_8(%arg0: i32) -> (i32, i32) {
    %c0_i32 = arith.constant 0 : i32
    %c0_i32_0 = arith.constant 0 : i32
    %c0_i32_1 = arith.constant 0 : i32
    return %c0_i32, %c0_i32_0 : i32, i32
  }
  func.func @transform_9(%arg0: i32) -> (i32, i32) {
    %c0_i32 = arith.constant 0 : i32
    %c0_i32_0 = arith.constant 0 : i32
    %c0_i32_1 = arith.constant 0 : i32
    return %c0_i32, %c0_i32_0 : i32, i32
  }
  func.func @transform_10(%arg0: i32) -> (i32, i32) {
    %c0_i32 = arith.constant 0 : i32
    %c0_i32_0 = arith.constant 0 : i32
    %c0_i32_1 = arith.constant 0 : i32
    return %c0_i32, %c0_i32_0 : i32, i32
  }
  func.func @transform_11(%arg0: i32) -> (i32, i32) {
    %c0_i32 = arith.constant 0 : i32
    %c0_i32_0 = arith.constant 0 : i32
    %c0_i32_1 = arith.constant 0 : i32
    return %c0_i32, %c0_i32_0 : i32, i32
  }
  func.func @transform_12(%arg0: i32) -> (i32, i32) {
    %c0_i32 = arith.constant 0 : i32
    %c0_i32_0 = arith.constant 0 : i32
    %c0_i32_1 = arith.constant 0 : i32
    return %c0_i32, %c0_i32_0 : i32, i32
  }
  func.func @transform_13(%arg0: i32) -> (i32, i32) {
    %c0_i32 = arith.constant 0 : i32
    %c0_i32_0 = arith.constant 0 : i32
    %c0_i32_1 = arith.constant 0 : i32
    return %c0_i32, %c0_i32_0 : i32, i32
  }
  func.func @transform_14(%arg0: i32) -> (i32, i32) {
    %c0_i32 = arith.constant 0 : i32
    %c0_i32_0 = arith.constant 0 : i32
    %c0_i32_1 = arith.constant 0 : i32
    return %c0_i32, %c0_i32_0 : i32, i32
  }
  func.func @transform_15(%arg0: i32) -> (i32, i32) {
    %c0_i32 = arith.constant 0 : i32
    %c0_i32_0 = arith.constant 0 : i32
    %c0_i32_1 = arith.constant 0 : i32
    return %c0_i32, %c0_i32_0 : i32, i32
  }
  func.func @transform_16(%arg0: i32) -> (i32, i32) {
    %c0_i32 = arith.constant 0 : i32
    %c0_i32_0 = arith.constant 0 : i32
    %c0_i32_1 = arith.constant 0 : i32
    return %c0_i32, %c0_i32_0 : i32, i32
  }
  func.func @transform_17(%arg0: i32) -> (i32, i32) {
    %c0_i32 = arith.constant 0 : i32
    %c0_i32_0 = arith.constant 0 : i32
    %c0_i32_1 = arith.constant 0 : i32
    return %c0_i32, %c0_i32_0 : i32, i32
  }
  func.func @transform_18(%arg0: i32) -> (i32, i32) {
    %c0_i32 = arith.constant 0 : i32
    %c0_i32_0 = arith.constant 0 : i32
    %c0_i32_1 = arith.constant 0 : i32
    return %c0_i32, %c0_i32_0 : i32, i32
  }
  func.func @transform_19(%arg0: i32) -> (i32, i32) {
    %c0_i32 = arith.constant 0 : i32
    %c0_i32_0 = arith.constant 0 : i32
    %c0_i32_1 = arith.constant 0 : i32
    return %c0_i32, %c0_i32_0 : i32, i32
  }
  func.func @transform_20(%arg0: i32) -> (i32, i32) {
    %c0_i32 = arith.constant 0 : i32
    %c0_i32_0 = arith.constant 0 : i32
    %c0_i32_1 = arith.constant 0 : i32
    return %c0_i32, %c0_i32_0 : i32, i32
  }
  func.func @transform_21(%arg0: i32) -> (i32, i32) {
    %c0_i32 = arith.constant 0 : i32
    %c0_i32_0 = arith.constant 0 : i32
    return %arg0, %c0_i32 : i32, i32
  }
}

</mosaic_0001>

<bundles_post_ra>
// kernel: multiset_net_forward.1
= control target key start
LH: loop header
LB: loop body
LE: loop exit
PB: predicated region body
PF: predicated region fallthrough
CT: control target
= control target key end

     0   :  { %vm162_vm0 = vcmask 1043456   ;;  %vm137_vm1 = vcmask 64512   ;;  %vm310_vm2 = vcmask 261120   ;;  %vm687_vm3 = vcmask 523264   ;;  %s2240_s2 = inlined_call_operand.vmem [shape: bf16[8,32], index: 2, kind: input, shape index: {}]   ;;  %s2241_s0 = inlined_call_operand.vmem [shape: bf16[128,8], index: 0, kind: input, shape index: {}]   ;;  %s2242_s4 = inlined_call_operand.vmem [shape: bf16[32,128], index: 4, kind: input, shape index: {}]   ;;  %s2243_s6 = inlined_call_operand.vmem [shape: bf16[128,64], index: 6, kind: input, shape index: {}]   ;;  %s2244_s3 = inlined_call_operand.vmem [shape: f32[1,32], index: 3, kind: input, shape index: {}]   ;;  %s2245_s8 = inlined_call_operand.vmem [shape: bf16[64,16], index: 8, kind: input, shape index: {}]   ;;  %s2246_s5 = inlined_call_operand.vmem [shape: f32[1,128], index: 5, kind: input, shape index: {}]   ;;  %s2247_s7 = inlined_call_operand.vmem [shape: f32[1,64], index: 7, kind: input, shape index: {}]   ;;  %s2248_s10 = inlined_call_operand.vmem [shape: bf16[16,1], index: 10, kind: input, shape index: {}]   ;;  %s2249_s13 = inlined_call_operand.vmem [shape: bf16[64,128], index: 13, kind: input, shape index: {}]   ;;  %s2250_s11 = inlined_call_operand.<no memory space> [shape: f32[1,1], index: 11, kind: input, shape index: {}]   ;;  %s2251_s9 = inlined_call_operand.vmem [shape: f32[1,16], index: 9, kind: input, shape index: {}]   ;;  %s2252_s1 = inlined_call_operand.vmem [shape: bf16[8,64], index: 1, kind: input, shape index: {}]   ;;  %s2253_s15 = inlined_call_operand.vmem [shape: bf16[128,64], index: 15, kind: input, shape index: {}]   ;;  %s2254_s17 = inlined_call_operand.vmem [shape: bf16[64,32], index: 17, kind: input, shape index: {}]   ;;  %s2255_s12 = inlined_call_operand.vmem [shape: bf16[2,128], index: 12, kind: input, shape index: {}]   ;;  %s2256_s14 = inlined_call_operand.vmem [shape: f32[1,128], index: 14, kind: input, shape index: {}]   ;;  %s2257_s19 = inlined_call_operand.vmem [shape: bf16[32,1], index: 19, kind: input, shape index: {}]   ;;  %s2258_s16 = inlined_call_operand.vmem [shape: f32[1,64], index: 16, kind: input, shape index: {}]   ;;  %s2259_s20 = inlined_call_operand.<no memory space> [shape: f32[1,1], index: 20, kind: input, shape index: {}]   ;;  %s2260_s18 = inlined_call_operand.vmem [shape: f32[1,32], index: 18, kind: input, shape index: {}]   ;;  %s2261_s21 = inlined_call_operand.vmem [shape: f32[8,1], index: 21, kind: output, shape index: {}]  }
   0x1   :  { %2266 = sst [smem:[#allocation4_spill]] %s2240_s2  ;;  %vm1847_vm4 = vmmov 0   ;;  %vm825_vm5 = vcmask 130048   ;;  %vm971_vm6 = vcmask 1041409   ;;  %vm973_vm7 = vcmask 1042434  }
   0x2   :  { %2267 = sst [smem:[#allocation5_spill]] %s2241_s0  ;;  %vm975_vm8 = vcmask 1043459   ;;  %vm977_vm9 = vcmask 1044484   ;;  %vm979_vm10 = vcmask 1045509   ;;  %vm981_vm11 = vcmask 1046534  }
   0x3   :  { %2268 = sst [smem:[#allocation6_spill]] %s2242_s4  ;;  %vm983_vm12 = vcmask 1047559   ;;  %vm1484_vm13 = vcmask 7168  }
   0x4   :  { %2269 = sst [smem:[#allocation7_spill]] %s2243_s6 }
   0x5   :  { %2270 = sst [smem:[#allocation8_spill]] %s2244_s3 }
   0x6   :  { %2271 = sst [smem:[#allocation9_spill]] %s2245_s8 }
   0x7   :  { %s2272_s26 = sld [smem:[#allocation4_spill]] }
   0x8   :  { %s2273_s28 = sld [smem:[#allocation5_spill]] }
   0x9   :  { %s2274_s3 = sld [smem:[#allocation6_spill]] }
   0xa   :  { %s2275_s0 = sld [smem:[#allocation7_spill]] }
   0xb   :  { %s2276_s30 = sld [smem:[#allocation8_spill]] }
   0xc   :  { %s2277_s27 = sld [smem:[#allocation9_spill]] }
   0xd   :  { %v89_v0 = vld [vmem:[%s2272_s26] sm:$0xf] }
   0xe   :  { %1800 = vmatprep.subr.msk.bf16.mxu0 %vm162_vm0, %v89_v0  ;;  %v164_v1 = vsel %vm162_vm0, %v89_v0, 0  ;;  %v1805_v2 = vld [vmem:[%s2273_s28] sm:$0xff]   ;;  %v1806_v3 = vld [vmem:[%s2273_s28 + $0x8] sm:$0xff]   ;;  %v1807_v4 = vld [vmem:[%s2273_s28 + $0x10] sm:$0xff]  }
   0xf   :  { %1643 = vmatpush3.bf16.msra.mxu0 %v164_v1  ;;  %1644 = vmatprep.mubr.msk.bf16.mxu0 %vm137_vm1, %v1805_v2  ;;  %v1808_v5 = vld [vmem:[%s2273_s28 + $0x18] sm:$0xff]   ;;  %v1809_v6 = vld [vmem:[%s2273_s28 + $0x20] sm:$0xff]   ;;  %v1810_v7 = vld [vmem:[%s2273_s28 + $0x28] sm:$0xff]  }
  0x10   :  { %v1811_v8 = vld [vmem:[%s2273_s28 + $0x30] sm:$0xff]   ;;  %v1812_v9 = vld [vmem:[%s2273_s28 + $0x38] sm:$0xff]   ;;  %v1813_v10 = vld [vmem:[%s2274_s3 + $0x8] sm:$0xff]  }
  0x11   :  { %1660 = vmatprep.subr.bf16.mxu1 %v1813_v10  ;;  %v1814_v11 = vld [vmem:[%s2274_s3] sm:$0xff]   ;;  %v1815_v12 = vld [vmem:[%s2275_s0 + $0x38] sm:$0xff]   ;;  %v1816_v13 = vld [vmem:[%s2275_s0 + $0x30] sm:$0xff]  }
  0x12   :  { %1645 = vmatmul.mubr.msk.bf16.vlgmr.msra.gmra.mxu0 %vm137_vm1, %v1806_v3  ;;  %1661 = vmatpush3.bf16.msra.mxu1 %v1813_v10  ;;  %v1817_v14 = vld [vmem:[%s2275_s0 + $0x28] sm:$0xff]   ;;  %v1818_v15 = vld [vmem:[%s2275_s0 + $0x20] sm:$0xff]   ;;  %v1819_v16 = vld [vmem:[%s2275_s0 + $0x18] sm:$0xff]  }
  0x13   :  { %1648 = vmatprep.mubr.msk.bf16.mxu0 %vm137_vm1, %v1807_v4  ;;  %1662 = vmatprep.subr.bf16.mxu1 %v1814_v11  ;;  %v1490_v19 = vld [vmem:[%s2276_s30] ss:$0 sm:$0xff]  ;;  %v1820_v10 = vld [vmem:[%s2275_s0 + $0x10] sm:$0xff]  }
  0x14   :  { %1680 = vmatprep.subr.bf16.mxu0 %v1815_v12 }
  0x15   :  { %1681 = vmatpush3.bf16.msra.mxu0 %v1815_v12  ;;  %v1822_v12 = vld [vmem:[%s2275_s0] sm:$0xff]  }
  0x16   :  { %1663 = vmatpush3.bf16.msra.mxu1 %v1814_v11  ;;  %1682 = vmatprep.subr.bf16.mxu0 %v1816_v13  ;;  %v1821_v11 = vld [vmem:[%s2275_s0 + $0x8] sm:$0xff]  }
  0x19   :  { %1683 = vmatpush3.bf16.msra.mxu0 %v1816_v13  ;;  %v1823_v13 = vld [vmem:[%s2277_s27 + $0x18] sm:$0xff]  }
  0x1a   :  { %1649 = vmatmul.mubr.msk.bf16.gmra.mxu0 %vm137_vm1, %v1808_v5  ;;  %1684 = vmatprep.subr.bf16.mxu0 %v1817_v14 }
  0x1b   :  { %1652 = vmatprep.mubr.msk.bf16.mxu0 %vm137_vm1, %v1809_v6  ;;  %1712 = vmatprep.subr.bf16.mxu1 %v1823_v13 }
  0x1d   :  { %1685 = vmatpush3.bf16.msra.mxu0 %v1817_v14  ;;  %v1824_v14 = vld [vmem:[%s2277_s27 + $0x10] sm:$0xff]  }
  0x1e   :  { %1686 = vmatprep.subr.bf16.mxu0 %v1818_v15 }
  0x21   :  { %1687 = vmatpush3.bf16.msra.mxu0 %v1818_v15  ;;  %v1825_v15 = vld [vmem:[%s2277_s27 + $0x8] sm:$0xff]  }
  0x22   :  { %1653 = vmatmul.mubr.msk.bf16.gmra.mxu0 %vm137_vm1, %v1810_v7  ;;  %1688 = vmatprep.subr.bf16.mxu0 %v1819_v16 }
  0x23   :  { %1656 = vmatprep.mubr.msk.bf16.mxu0 %vm137_vm1, %v1811_v8 }
  0x25   :  { %1689 = vmatpush3.bf16.msra.mxu0 %v1819_v16 }
  0x26   :  { %1690 = vmatprep.subr.bf16.mxu0 %v1820_v10 }
  0x29   :  { %1691 = vmatpush3.bf16.msra.mxu0 %v1820_v10 }
  0x2a   :  { %1657 = vmatmul.mubr.msk.bf16.gmra.mxu0 %vm137_vm1, %v1812_v9  ;;  %1692 = vmatprep.subr.bf16.mxu0 %v1821_v11 }
  0x2d   :  { %1693 = vmatpush3.bf16.msra.mxu0 %v1821_v11 }
  0x2e   :  { %1694 = vmatprep.subr.bf16.mxu0 %v1822_v12 }
  0x31   :  { %1695 = vmatpush3.bf16.msra.mxu0 %v1822_v12  ;;  %v1518_v12 = vld [vmem:[%s2247_s7] ss:$0 sm:$0xff] }
  0xd2   :  { %v1646_v17 = vpop.f32.mrf.mxu0 }
  0xd3   :  { %v209_v23 = vadd.f32 %v1646_v17, %v1490_v19 }
  0xd4   :  { %v200_v18 = vpop.f32.mrf.mxu0 }
  0xd5   :  { %v201_v21 = vadd.f32 %v1490_v19, %v200_v18  ;;  %v265_v30 = vmax.f32 %v209_v23, 0.0  ;;  %v1507_v18 = vld [vmem:[%s2246_s5] ss:$0 sm:$0xff] }
  0xd6   :  { %v1647_v20 = vpop.f32.mrf.mxu0 }
  0xd7   :  { %v212_v22 = vadd.f32 %v1647_v20, %v1490_v19  ;;  %v263_v28 = vmax.f32 %v201_v21, 0.0 }
  0xd8   :  { %v203_v24 = vpop.f32.mrf.mxu0 }
  0xd9   :  { %v204_v25 = vadd.f32 %v1490_v19, %v203_v24  ;;  %v266_v26 = vmax.f32 %v212_v22, 0.0 }
  0xda   :  { %v1650_v27 = vpop.f32.mrf.mxu0 }
  0xdb   :  { %v264_v29 = vmax.f32 %v204_v25, 0.0  ;;  %v280_v33 = vpack.c.bf16 %v266_v26, %v265_v30  ;;  %v225_v37 = vadd.f32 %v1650_v27, %v1490_v19 }
  0xdc   :  { %v216_v31 = vpop.f32.mrf.mxu0 }
  0xdd   :  { %v279_v32 = vpack.c.bf16 %v264_v29, %v263_v28  ;;  %v217_v35 = vadd.f32 %v1490_v19, %v216_v31  ;;  %v269_v44 = vmax.f32 %v225_v37, 0.0 }
  0xde   :  { %v1651_v34 = vpop.f32.mrf.mxu0 }
  0xdf   :  { %v228_v36 = vadd.f32 %v1651_v34, %v1490_v19  ;;  %1664 = vmatprep.mubr.msk.bf16.mxu1 %vm310_vm2, %v279_v32  ;;  %v267_v42 = vmax.f32 %v217_v35, 0.0 }
  0xe0   :  { %v219_v38 = vpop.f32.mrf.mxu0  ;;  %1665 = vmatmul.mubr.msk.bf16.vlgmr.msra.gmra.mxu1 %vm310_vm2, %v280_v33 }
  0xe1   :  { %v220_v39 = vadd.f32 %v1490_v19, %v219_v38  ;;  %v270_v40 = vmax.f32 %v228_v36, 0.0  ;;  %1713 = vmatpush3.bf16.msra.mxu1 %v1823_v13 }
  0xe2   :  { %v1654_v41 = vpop.f32.mrf.mxu0  ;;  %1714 = vmatprep.subr.bf16.mxu1 %v1824_v14 }
  0xe3   :  { %v268_v43 = vmax.f32 %v220_v39, 0.0  ;;  %v282_v47 = vpack.c.bf16 %v270_v40, %v269_v44  ;;  %v241_v51 = vadd.f32 %v1654_v41, %v1490_v19 }
  0xe4   :  { %v232_v45 = vpop.f32.mrf.mxu0 }
  0xe5   :  { %v281_v46 = vpack.c.bf16 %v268_v43, %v267_v42  ;;  %v233_v49 = vadd.f32 %v1490_v19, %v232_v45  ;;  %v273_v58 = vmax.f32 %v241_v51, 0.0  ;;  %1715 = vmatpush3.bf16.msra.mxu1 %v1824_v14 }
  0xe6   :  { %v1655_v48 = vpop.f32.mrf.mxu0  ;;  %1716 = vmatprep.subr.bf16.mxu1 %v1825_v15 }
  0xe7   :  { %v244_v50 = vadd.f32 %v1655_v48, %v1490_v19  ;;  %1668 = vmatprep.mubr.msk.bf16.mxu1 %vm310_vm2, %v281_v46  ;;  %v271_v56 = vmax.f32 %v233_v49, 0.0 }
  0xe8   :  { %v235_v52 = vpop.f32.mrf.mxu0  ;;  %1669 = vmatmul.mubr.msk.bf16.gmra.mxu1 %vm310_vm2, %v282_v47 }
  0xe9   :  { %v236_v53 = vadd.f32 %v1490_v19, %v235_v52  ;;  %v274_v54 = vmax.f32 %v244_v50, 0.0  ;;  %1717 = vmatpush3.bf16.msra.mxu1 %v1825_v15 }
  0xea   :  { %v1658_v55 = vpop.f32.mrf.mxu0 }
  0xeb   :  { %v272_v57 = vmax.f32 %v236_v53, 0.0  ;;  %v284_v61 = vpack.c.bf16 %v274_v54, %v273_v58  ;;  %v257_v1 = vadd.f32 %v1658_v55, %v1490_v19 }
  0xec   :  { %v248_v59 = vpop.f32.mrf.mxu0 }
  0xed   :  { %v283_v60 = vpack.c.bf16 %v272_v57, %v271_v56  ;;  %v249_v63 = vadd.f32 %v1490_v19, %v248_v59  ;;  %v277_v7 = vmax.f32 %v257_v1, 0.0 }
  0xee   :  { %v1659_v62 = vpop.f32.mrf.mxu0 }
  0xef   :  { %v260_v0 = vadd.f32 %v1659_v62, %v1490_v19  ;;  %1672 = vmatprep.mubr.msk.bf16.mxu1 %vm310_vm2, %v283_v60  ;;  %v275_v5 = vmax.f32 %v249_v63, 0.0 }
  0xf0   :  { %v251_v2 = vpop.f32.mrf.mxu0  ;;  %1673 = vmatmul.mubr.msk.bf16.gmra.mxu1 %vm310_vm2, %v284_v61 }
  0xf1   :  { %v252_v3 = vadd.f32 %v1490_v19, %v251_v2  ;;  %v278_v4 = vmax.f32 %v260_v0, 0.0 }
  0xf3   :  { %v276_v6 = vmax.f32 %v252_v3, 0.0  ;;  %v286_v9 = vpack.c.bf16 %v278_v4, %v277_v7 }
  0xf5   :  { %v285_v8 = vpack.c.bf16 %v276_v6, %v275_v5 }
  0xf7   :  { %1676 = vmatprep.mubr.msk.bf16.mxu1 %vm310_vm2, %v285_v8 }
  0xf8   :  { %1677 = vmatmul.mubr.msk.bf16.gmra.mxu1 %vm310_vm2, %v286_v9  ;;  %v1826_v9 = vld [vmem:[%s2277_s27] sm:$0xff]  }
  0xf9   :  { %1718 = vmatprep.subr.bf16.mxu1 %v1826_v9 }
  0xfa   :  { %1719 = vmatpush3.bf16.msra.mxu1 %v1826_v9 }
 0x1a0   :  { %v1666_v16 = vpop.f32.mrf.mxu1 }
 0x1a1   :  { %v378_v22 = vadd.f32 %v1666_v16, %v1507_v18 }
 0x1a2   :  { %v369_v17 = vpop.f32.mrf.mxu1 }
 0x1a3   :  { %v370_v20 = vadd.f32 %v1507_v18, %v369_v17  ;;  %v434_v29 = vmax.f32 %v378_v22, 0.0 }
 0x1a4   :  { %v1667_v19 = vpop.f32.mrf.mxu1 }
 0x1a5   :  { %v381_v21 = vadd.f32 %v1667_v19, %v1507_v18  ;;  %v432_v27 = vmax.f32 %v370_v20, 0.0 }
 0x1a6   :  { %v372_v23 = vpop.f32.mrf.mxu1 }
 0x1a7   :  { %v373_v24 = vadd.f32 %v1507_v18, %v372_v23  ;;  %v435_v25 = vmax.f32 %v381_v21, 0.0 }
 0x1a8   :  { %v1670_v26 = vpop.f32.mrf.mxu1 }
 0x1a9   :  { %v433_v28 = vmax.f32 %v373_v24, 0.0  ;;  %v449_v32 = vpack.c.bf16 %v435_v25, %v434_v29  ;;  %v394_v36 = vadd.f32 %v1670_v26, %v1507_v18 }
 0x1aa   :  { %v385_v30 = vpop.f32.mrf.mxu1 }
 0x1ab   :  { %v448_v31 = vpack.c.bf16 %v433_v28, %v432_v27  ;;  %v386_v34 = vadd.f32 %v1507_v18, %v385_v30  ;;  %v438_v43 = vmax.f32 %v394_v36, 0.0 }
 0x1ac   :  { %v1671_v33 = vpop.f32.mrf.mxu1 }
 0x1ad   :  { %v397_v35 = vadd.f32 %v1671_v33, %v1507_v18  ;;  %1696 = vmatprep.mubr.bf16.mxu0 %v448_v31  ;;  %v436_v41 = vmax.f32 %v386_v34, 0.0 }
 0x1ae   :  { %v388_v37 = vpop.f32.mrf.mxu1  ;;  %1697 = vmatmul.mubr.bf16.vlgmr.msra.gmra.mxu0 %v449_v32 }
 0x1af   :  { %v389_v38 = vadd.f32 %v1507_v18, %v388_v37  ;;  %v439_v39 = vmax.f32 %v397_v35, 0.0 }
 0x1b0   :  { %v1674_v40 = vpop.f32.mrf.mxu1 }
 0x1b1   :  { %v437_v42 = vmax.f32 %v389_v38, 0.0  ;;  %v451_v46 = vpack.c.bf16 %v439_v39, %v438_v43  ;;  %v410_v50 = vadd.f32 %v1674_v40, %v1507_v18 }
 0x1b2   :  { %v401_v44 = vpop.f32.mrf.mxu1 }
 0x1b3   :  { %v450_v45 = vpack.c.bf16 %v437_v42, %v436_v41  ;;  %v402_v48 = vadd.f32 %v1507_v18, %v401_v44  ;;  %v442_v57 = vmax.f32 %v410_v50, 0.0 }
 0x1b4   :  { %v1675_v47 = vpop.f32.mrf.mxu1 }
 0x1b5   :  { %v413_v49 = vadd.f32 %v1675_v47, %v1507_v18  ;;  %1700 = vmatprep.mubr.bf16.mxu0 %v450_v45  ;;  %v440_v55 = vmax.f32 %v402_v48, 0.0 }
 0x1b6   :  { %v404_v51 = vpop.f32.mrf.mxu1  ;;  %1701 = vmatmul.mubr.bf16.gmra.mxu0 %v451_v46 }
 0x1b7   :  { %v405_v52 = vadd.f32 %v1507_v18, %v404_v51  ;;  %v443_v53 = vmax.f32 %v413_v49, 0.0 }
 0x1b8   :  { %v1678_v54 = vpop.f32.mrf.mxu1 }
 0x1b9   :  { %v441_v56 = vmax.f32 %v405_v52, 0.0  ;;  %v453_v60 = vpack.c.bf16 %v443_v53, %v442_v57  ;;  %v426_v0 = vadd.f32 %v1678_v54, %v1507_v18 }
 0x1ba   :  { %v417_v58 = vpop.f32.mrf.mxu1 }
 0x1bb   :  { %v452_v59 = vpack.c.bf16 %v441_v56, %v440_v55  ;;  %v418_v62 = vadd.f32 %v1507_v18, %v417_v58  ;;  %v446_v6 = vmax.f32 %v426_v0, 0.0 }
 0x1bc   :  { %v1679_v61 = vpop.f32.mrf.mxu1 }
 0x1bd   :  { %v429_v63 = vadd.f32 %v1679_v61, %v1507_v18  ;;  %1704 = vmatprep.mubr.bf16.mxu0 %v452_v59  ;;  %v444_v4 = vmax.f32 %v418_v62, 0.0 }
 0x1be   :  { %v420_v1 = vpop.f32.mrf.mxu1  ;;  %1705 = vmatmul.mubr.bf16.gmra.mxu0 %v453_v60 }
 0x1bf   :  { %v421_v2 = vadd.f32 %v1507_v18, %v420_v1  ;;  %v447_v3 = vmax.f32 %v429_v63, 0.0 }
 0x1c1   :  { %v445_v5 = vmax.f32 %v421_v2, 0.0  ;;  %v455_v8 = vpack.c.bf16 %v447_v3, %v446_v6  ;;  %v1846_v3 = vmov 0.0   ;;  %v2078_v6 = vld [vmem:[%s2251_s9] ss:$0 sm:$0xff] }
 0x1c2   :  { %1736 = vmatprep.subr.bf16.mxu0 %v1846_v3  ;;  %1742 = vmatprep.subr.bf16.mxu1 %v1846_v3 }
 0x1c3   :  { %v454_v7 = vpack.c.bf16 %v445_v5, %v444_v4  ;;  %v1827_v4 = vld [vmem:[%s2248_s10] sm:$0xff]   ;;  %v26_v5 = vstv %s2250_s11 }
 0x1c4   :  { %1737 = vmatpush3.bf16.msra.mxu0 %v1827_v4  ;;  %27 = vst [vmem:[#allocation2] sm:$0x1] %v26_v5 }
 0x1c5   :  { %1708 = vmatprep.mubr.bf16.mxu0 %v454_v7  ;;  %1748 = vmatprep.subr.bf16.mxu0 %v1846_v3 }
 0x1c6   :  { %1709 = vmatmul.mubr.bf16.gmra.mxu0 %v455_v8 }
 0x1c7   :  { %1738 = vmatprep.mubr.msk.bf16.mxu0 %vm1847_vm4, %v1846_v3 }
 0x26e   :  { %v1698_v10 = vpop.f32.mrf.mxu0 }
 0x26f   :  { %v570_v16 = vadd.f32 %v1698_v10, %v1518_v12 }
 0x270   :  { %v561_v11 = vpop.f32.mrf.mxu0 }
 0x271   :  { %v562_v14 = vadd.f32 %v1518_v12, %v561_v11  ;;  %v626_v23 = vmax.f32 %v570_v16, 0.0 }
 0x272   :  { %v1699_v13 = vpop.f32.mrf.mxu0 }
 0x273   :  { %v573_v15 = vadd.f32 %v1699_v13, %v1518_v12  ;;  %v624_v21 = vmax.f32 %v562_v14, 0.0 }
 0x274   :  { %v564_v17 = vpop.f32.mrf.mxu0 }
 0x275   :  { %v565_v18 = vadd.f32 %v1518_v12, %v564_v17  ;;  %v627_v19 = vmax.f32 %v573_v15, 0.0 }
 0x276   :  { %v1702_v20 = vpop.f32.mrf.mxu0 }
 0x277   :  { %v625_v22 = vmax.f32 %v565_v18, 0.0  ;;  %v641_v26 = vpack.c.bf16 %v627_v19, %v626_v23  ;;  %v586_v30 = vadd.f32 %v1702_v20, %v1518_v12 }
 0x278   :  { %v577_v24 = vpop.f32.mrf.mxu0 }
 0x279   :  { %v640_v25 = vpack.c.bf16 %v625_v22, %v624_v21  ;;  %v578_v28 = vadd.f32 %v1518_v12, %v577_v24  ;;  %v630_v37 = vmax.f32 %v586_v30, 0.0 }
 0x27a   :  { %v1703_v27 = vpop.f32.mrf.mxu0 }
 0x27b   :  { %v589_v29 = vadd.f32 %v1703_v27, %v1518_v12  ;;  %1720 = vmatprep.mubr.msk.bf16.mxu1 %vm687_vm3, %v640_v25  ;;  %v628_v35 = vmax.f32 %v578_v28, 0.0 }
 0x27c   :  { %v580_v31 = vpop.f32.mrf.mxu0  ;;  %1721 = vmatmul.mubr.msk.bf16.vlgmr.msra.gmra.mxu1 %vm687_vm3, %v641_v26 }
 0x27d   :  { %v581_v32 = vadd.f32 %v1518_v12, %v580_v31  ;;  %v631_v33 = vmax.f32 %v589_v29, 0.0  ;;  %1743 = vmatpush3.bf16.msra.mxu1 %v1827_v4 }
 0x27e   :  { %v1706_v34 = vpop.f32.mrf.mxu0  ;;  %1760 = vmatprep.subr.bf16.mxu1 %v1846_v3 }
 0x27f   :  { %v629_v36 = vmax.f32 %v581_v32, 0.0  ;;  %v643_v40 = vpack.c.bf16 %v631_v33, %v630_v37  ;;  %v602_v44 = vadd.f32 %v1706_v34, %v1518_v12 }
 0x280   :  { %v593_v38 = vpop.f32.mrf.mxu0 }
 0x281   :  { %v642_v39 = vpack.c.bf16 %v629_v36, %v628_v35  ;;  %v594_v42 = vadd.f32 %v1518_v12, %v593_v38  ;;  %v634_v51 = vmax.f32 %v602_v44, 0.0 }
 0x282   :  { %v1707_v41 = vpop.f32.mrf.mxu0 }
 0x283   :  { %v605_v43 = vadd.f32 %v1707_v41, %v1518_v12  ;;  %1724 = vmatprep.mubr.msk.bf16.mxu1 %vm687_vm3, %v642_v39  ;;  %v632_v49 = vmax.f32 %v594_v42, 0.0 }
 0x284   :  { %v596_v45 = vpop.f32.mrf.mxu0  ;;  %1725 = vmatmul.mubr.msk.bf16.gmra.mxu1 %vm687_vm3, %v643_v40 }
 0x285   :  { %v597_v46 = vadd.f32 %v1518_v12, %v596_v45  ;;  %v635_v47 = vmax.f32 %v605_v43, 0.0 }
 0x286   :  { %v1710_v48 = vpop.f32.mrf.mxu0 }
 0x287   :  { %v633_v50 = vmax.f32 %v597_v46, 0.0  ;;  %v645_v54 = vpack.c.bf16 %v635_v47, %v634_v51  ;;  %v618_v58 = vadd.f32 %v1710_v48, %v1518_v12 }
 0x288   :  { %v609_v52 = vpop.f32.mrf.mxu0 }
 0x289   :  { %v644_v53 = vpack.c.bf16 %v633_v50, %v632_v49  ;;  %v610_v56 = vadd.f32 %v1518_v12, %v609_v52  ;;  %v638_v0 = vmax.f32 %v618_v58, 0.0 }
 0x28a   :  { %v1711_v55 = vpop.f32.mrf.mxu0 }
 0x28b   :  { %v621_v57 = vadd.f32 %v1711_v55, %v1518_v12  ;;  %1728 = vmatprep.mubr.msk.bf16.mxu1 %vm687_vm3, %v644_v53  ;;  %v636_v62 = vmax.f32 %v610_v56, 0.0 }
 0x28c   :  { %v612_v59 = vpop.f32.mrf.mxu0  ;;  %1729 = vmatmul.mubr.msk.bf16.gmra.mxu1 %vm687_vm3, %v645_v54 }
 0x28d   :  { %v613_v60 = vadd.f32 %v1518_v12, %v612_v59  ;;  %v639_v61 = vmax.f32 %v621_v57, 0.0 }
 0x28f   :  { %v637_v63 = vmax.f32 %v613_v60, 0.0  ;;  %v647_v2 = vpack.c.bf16 %v639_v61, %v638_v0 }
 0x291   :  { %v646_v1 = vpack.c.bf16 %v637_v63, %v636_v62 }
 0x293   :  { %1732 = vmatprep.mubr.msk.bf16.mxu1 %vm687_vm3, %v646_v1 }
 0x294   :  { %1733 = vmatmul.mubr.msk.bf16.gmra.mxu1 %vm687_vm3, %v647_v2 }
 0x295   :  { %1744 = vmatprep.mubr.msk.bf16.mxu1 %vm1847_vm4, %v1846_v3 }
 0x33c   :  { %v1722_v7 = vpop.f32.mrf.mxu1 }
 0x33d   :  { %v755_v8 = vadd.f32 %v1722_v7, %v2078_v6 }
 0x33e   :  { %v746_v9 = vpop.f32.mrf.mxu1 }
 0x33f   :  { %v811_v10 = vmax.f32 %v755_v8, 0.0  ;;  %v747_v11 = vadd.f32 %v2078_v6, %v746_v9 }
 0x340   :  { %v1723_v12 = vpop.f32.mrf.mxu1 }
 0x341   :  { %v840_v13 = vsel %vm825_vm5, %v811_v10, 0.0  ;;  %v809_v14 = vmax.f32 %v747_v11, 0.0  ;;  %v758_v15 = vadd.f32 %v1723_v12, %v2078_v6 }
 0x342   :  { %v841_v16 = vrot.slane %v840_v13, 4  ;;  %v749_v17 = vpop.f32.mrf.mxu1 }
 0x343   :  { %v826_v18 = vsel %vm825_vm5, %v809_v14, 0.0  ;;  %v812_v19 = vmax.f32 %v758_v15, 0.0  ;;  %v750_v20 = vadd.f32 %v2078_v6, %v749_v17 }
 0x344   :  { %v842_v21 = vadd.f32 %v841_v16, %v840_v13  ;;  %v827_v22 = vrot.slane %v826_v18, 4  ;;  %v1726_v23 = vpop.f32.mrf.mxu1 }
 0x345   :  { %v847_v24 = vsel %vm825_vm5, %v812_v19, 0.0  ;;  %v810_v25 = vmax.f32 %v750_v20, 0.0  ;;  %v771_v26 = vadd.f32 %v1726_v23, %v2078_v6 }
 0x346   :  { %v828_v27 = vadd.f32 %v827_v22, %v826_v18  ;;  %v848_v28 = vrot.slane %v847_v24, 4  ;;  %v762_v29 = vpop.f32.mrf.mxu1  ;;  %v843_v30 = vrot.slane %v842_v21, 2 }
 0x347   :  { %v833_v31 = vsel %vm825_vm5, %v810_v25, 0.0  ;;  %v815_v32 = vmax.f32 %v771_v26, 0.0  ;;  %v763_v33 = vadd.f32 %v2078_v6, %v762_v29 }
 0x348   :  { %v829_v34 = vrot.slane %v828_v27, 2  ;;  %v849_v35 = vadd.f32 %v848_v28, %v847_v24  ;;  %v834_v36 = vrot.slane %v833_v31, 4  ;;  %v1727_v37 = vpop.f32.mrf.mxu1  ;;  %v844_v44 = vadd.f32 %v843_v30, %v842_v21 }
 0x349   :  { %v868_v38 = vsel %vm825_vm5, %v815_v32, 0.0  ;;  %v813_v39 = vmax.f32 %v763_v33, 0.0  ;;  %v774_v42 = vadd.f32 %v1727_v37, %v2078_v6 }
 0x34a   :  { %v830_v40 = vadd.f32 %v829_v34, %v828_v27  ;;  %v850_v41 = vrot.slane %v849_v35, 2  ;;  %v765_v43 = vpop.f32.mrf.mxu1  ;;  %v835_v45 = vadd.f32 %v834_v36, %v833_v31  ;;  %v869_v48 = vrot.slane %v868_v38, 4 }
 0x34b   :  { %v854_v46 = vsel %vm825_vm5, %v813_v39, 0.0  ;;  %v766_v47 = vadd.f32 %v2078_v6, %v765_v43  ;;  %v816_v54 = vmax.f32 %v774_v42, 0.0  ;;  %v845_v56 = vrot.slane %v844_v44, 1 }
 0x34c   :  { %v1730_v49 = vpop.f32.mrf.mxu1  ;;  %v831_v50 = vrot.slane %v830_v40, 1  ;;  %v851_v51 = vadd.f32 %v850_v41, %v849_v35  ;;  %v855_v52 = vrot.slane %v854_v46, 4  ;;  %v836_v57 = vrot.slane %v835_v45, 2 }
 0x34d   :  { %v814_v53 = vmax.f32 %v766_v47, 0.0  ;;  %v870_v63 = vadd.f32 %v869_v48, %v868_v38  ;;  %v875_v1 = vsel %vm825_vm5, %v816_v54, 0.0  ;;  %v787_v2 = vadd.f32 %v1730_v49, %v2078_v6 }
 0x34e   :  { %v778_v55 = vpop.f32.mrf.mxu1  ;;  %v856_v58 = vadd.f32 %v855_v52, %v854_v46  ;;  %v832_v61 = vadd.f32 %v831_v50, %v830_v40  ;;  %v852_v62 = vrot.slane %v851_v51, 1  ;;  %v846_v5 = vadd.f32 %v845_v56, %v844_v44 }
 0x34f   :  { %v861_v59 = vsel %vm825_vm5, %v814_v53, 0.0  ;;  %v837_v7 = vadd.f32 %v836_v57, %v835_v45  ;;  %v819_v10 = vmax.f32 %v787_v2, 0.0  ;;  %v871_v13 = vrot.slane %v870_v63, 2 }
 0x350   :  { %v1731_v60 = vpop.f32.mrf.mxu1  ;;  %v862_v0 = vrot.slane %v861_v59, 4  ;;  %v857_v8 = vrot.slane %v856_v58, 2  ;;  %v939_v11 = vpack.c.bf16 %v832_v61, %v832_v61  ;;  %v853_v12 = vadd.f32 %v852_v62, %v851_v51 }
 0x351   :  { %v876_v14 = vrot.slane %v875_v1, 4  ;;  %v896_v16 = vsel %vm825_vm5, %v819_v10, 0.0  ;;  %v779_v17 = vadd.f32 %v2078_v6, %v778_v55  ;;  %v790_v18 = vadd.f32 %v1731_v60, %v2078_v6 }
 0x352   :  { %v781_v4 = vpop.f32.mrf.mxu1  ;;  %v863_v9 = vadd.f32 %v862_v0, %v861_v59  ;;  %v940_v19 = vpack.c.bf16 %v846_v5, %v846_v5  ;;  %v838_v20 = vrot.slane %v837_v7, 1  ;;  %v858_v21 = vadd.f32 %v857_v8, %v856_v58 }
 0x353   :  { %v897_v23 = vrot.slane %v896_v16, 4  ;;  %v817_v24 = vmax.f32 %v779_v17, 0.0  ;;  %v820_v25 = vmax.f32 %v790_v18, 0.0  ;;  %v963_v26 = vunpack.c.l.b16 %v939_v11 }
 0x354   :  { %v1734_v15 = vpop.f32.mrf.mxu1  ;;  %v864_v22 = vrot.slane %v863_v9, 2  ;;  %v1036_v27 = vpack.c.bf16 %v853_v12, %v853_v12  ;;  %v872_v28 = vadd.f32 %v871_v13, %v870_v63  ;;  %v877_v29 = vadd.f32 %v876_v14, %v875_v1 }
 0x355   :  { %v898_v31 = vadd.f32 %v897_v23, %v896_v16  ;;  %v882_v32 = vsel %vm825_vm5, %v817_v24, 0.0  ;;  %v903_v33 = vsel %vm825_vm5, %v820_v25, 0.0  ;;  %v782_v34 = vadd.f32 %v2078_v6, %v781_v4 }
 0x356   :  { %v794_v30 = vpop.f32.mrf.mxu1  ;;  %v964_v35 = vunpack.c.l.b16 %v940_v19  ;;  %v2103_v36 = vadd.f32 %v838_v20, %v837_v7  ;;  %v859_v37 = vrot.slane %v858_v21, 1  ;;  %v883_v38 = vrot.slane %v882_v32, 4 }
 0x357   :  { %v865_v39 = vadd.f32 %v864_v22, %v863_v9  ;;  %v904_v40 = vrot.slane %v903_v33, 4  ;;  %v818_v41 = vmax.f32 %v782_v34, 0.0  ;;  %v803_v42 = vadd.f32 %v1734_v15, %v2078_v6 }
 0x358   :  { %v2107_v43 = vsel %vm971_vm6, %v964_v35, %v963_v26  ;;  %v873_v44 = vrot.slane %v872_v28, 1  ;;  %v878_v45 = vrot.slane %v877_v29, 2  ;;  %v884_v46 = vadd.f32 %v883_v38, %v882_v32  ;;  %v1735_v47 = vpop.f32.mrf.mxu1 }
 0x359   :  { %v2109_v48 = vunpack.c.l.b16 %v1036_v27  ;;  %v899_v49 = vrot.slane %v898_v31, 2  ;;  %v905_v50 = vadd.f32 %v904_v40, %v903_v33  ;;  %v889_v51 = vsel %vm825_vm5, %v818_v41, 0.0 }
 0x35a   :  { %v1035_v52 = vpack.c.bf16 %v2103_v36, %v2103_v36  ;;  %v885_v53 = vrot.slane %v884_v46, 2  ;;  %v890_v54 = vrot.slane %v889_v51, 4  ;;  %v823_v55 = vmax.f32 %v803_v42, 0.0  ;;  %v797_v0 = vpop.f32.mrf.mxu1 }
 0x35b   :  { %v860_v56 = vadd.f32 %v859_v37, %v858_v21  ;;  %v866_v57 = vrot.slane %v865_v39, 1  ;;  %v795_v58 = vadd.f32 %v2078_v6, %v794_v30  ;;  %v806_v59 = vadd.f32 %v1735_v47, %v2078_v6 }
 0x35c   :  { %v874_v60 = vadd.f32 %v873_v44, %v872_v28  ;;  %v886_v61 = vadd.f32 %v885_v53, %v884_v46  ;;  %v891_v62 = vadd.f32 %v890_v54, %v889_v51  ;;  %v924_v63 = vsel %vm825_vm5, %v823_v55, 0.0 }
 0x35d   :  { %v879_v1 = vadd.f32 %v878_v45, %v877_v29  ;;  %v900_v2 = vadd.f32 %v899_v49, %v898_v31  ;;  %v906_v4 = vrot.slane %v905_v50, 2  ;;  %v925_v5 = vrot.slane %v924_v63, 4 }
 0x35e   :  { %v887_v7 = vrot.slane %v886_v61, 1  ;;  %v892_v8 = vrot.slane %v891_v62, 2  ;;  %v821_v9 = vmax.f32 %v795_v58, 0.0  ;;  %v824_v10 = vmax.f32 %v806_v59, 0.0 }
 0x35f   :  { %v941_v11 = vpack.c.bf16 %v860_v56, %v860_v56  ;;  %v867_v12 = vadd.f32 %v866_v57, %v865_v39  ;;  %v926_v13 = vadd.f32 %v925_v5, %v924_v63  ;;  %v798_v14 = vadd.f32 %v2078_v6, %v797_v0 }
 0x360   :  { %v888_v15 = vadd.f32 %v887_v7, %v886_v61  ;;  %v893_v16 = vadd.f32 %v892_v8, %v891_v62  ;;  %v910_v17 = vsel %vm825_vm5, %v821_v9, 0.0  ;;  %v931_v18 = vsel %vm825_vm5, %v824_v10, 0.0 }
 0x361   :  { %v880_v19 = vrot.slane %v879_v1, 1  ;;  %v901_v20 = vrot.slane %v900_v2, 1  ;;  %v927_v21 = vrot.slane %v926_v13, 2  ;;  %v911_v22 = vrot.slane %v910_v17, 4 }
 0x362   :  { %v907_v23 = vadd.f32 %v906_v4, %v905_v50  ;;  %v894_v24 = vrot.slane %v893_v16, 1  ;;  %v932_v25 = vrot.slane %v931_v18, 4  ;;  %v822_v26 = vmax.f32 %v798_v14, 0.0 }
 0x363   :  { %v942_v27 = vpack.c.bf16 %v874_v60, %v874_v60  ;;  %v965_v28 = vunpack.c.l.b16 %v941_v11  ;;  %v928_v29 = vadd.f32 %v927_v21, %v926_v13  ;;  %v912_v6 = vadd.f32 %v911_v22, %v910_v17  ;;  %v1828_v21 = vld [vmem:[%s2249_s13 + $0x18] sm:$0xff]  }
 0x364   :  { %v1037_v30 = vpack.c.bf16 %v867_v12, %v867_v12  ;;  %v943_v31 = vpack.c.bf16 %v888_v15, %v888_v15  ;;  %v933_v32 = vadd.f32 %v932_v25, %v931_v18  ;;  %v917_v33 = vsel %vm825_vm5, %v822_v26, 0.0 }
 0x365   :  { %v895_v34 = vadd.f32 %v894_v24, %v893_v16  ;;  %v929_v35 = vrot.slane %v928_v29, 1  ;;  %v913_v36 = vrot.slane %v912_v6, 2  ;;  %v918_v37 = vrot.slane %v917_v33, 4 }
 0x366   :  { %v881_v38 = vadd.f32 %v880_v19, %v879_v1  ;;  %v902_v39 = vadd.f32 %v901_v20, %v900_v2  ;;  %v908_v40 = vrot.slane %v907_v23, 1  ;;  %v934_v41 = vrot.slane %v933_v32, 2 }
 0x367   :  { %v1051_v42 = vunpack.c.l.b16 %v1035_v52  ;;  %v966_v44 = vunpack.c.l.b16 %v942_v27  ;;  %v914_v45 = vadd.f32 %v913_v36, %v912_v6  ;;  %v919_v46 = vadd.f32 %v918_v37, %v917_v33  ;;  %v1830_v6 = vld [vmem:[%s2249_s13 + $0x8] sm:$0xff]   ;;  %v1832_v33 = vld [vmem:[%s2253_s15 + $0x38] sm:$0xff]   ;;  %v1835_v36 = vld [vmem:[%s2253_s15 + $0x20] sm:$0xff]  }
 0x368   :  { %v974_v47 = vsel %vm973_vm7, %v965_v28, %v2107_v43  ;;  %v1053_v49 = vunpack.c.l.b16 %v1037_v30  ;;  %v930_v50 = vadd.f32 %v929_v35, %v928_v29  ;;  %v935_v51 = vadd.f32 %v934_v41, %v933_v32  ;;  %v1829_v28 = vld [vmem:[%s2249_s13 + $0x10] sm:$0xff]   ;;  %v1831_v30 = vld [vmem:[%s2249_s13] sm:$0xff]   ;;  %v1834_v35 = vld [vmem:[%s2253_s15 + $0x28] sm:$0xff]  }
 0x369   :  { %v967_v53 = vunpack.c.l.b16 %v943_v31  ;;  %v1039_v54 = vpack.c.bf16 %v895_v34, %v895_v34  ;;  %v915_v55 = vrot.slane %v914_v45, 1  ;;  %v920_v56 = vrot.slane %v919_v46, 2  ;;  %v1133_v31 = vld [vmem:[%s2252_s1] sm:$0xf]  ;;  %v1833_v34 = vld [vmem:[%s2253_s15 + $0x30] sm:$0xff]  }
 0x36a   :  { %v1038_v57 = vpack.c.bf16 %v881_v38, %v881_v38  ;;  %v944_v58 = vpack.c.bf16 %v902_v39, %v902_v39  ;;  %v909_v59 = vadd.f32 %v908_v40, %v907_v23  ;;  %v936_v60 = vrot.slane %v935_v51, 1  ;;  %v1540_v37 = vld [vmem:[#allocation2] ss:$0 sm:$0xff]  ;;  %v1836_v38 = vld [vmem:[%s2253_s15 + $0x18] sm:$0xff]  }
 0x36b   :  { %v1059_v52 = vsel %vm971_vm6, %v2109_v48, %v1051_v42  ;;  %v916_v61 = vadd.f32 %v915_v55, %v914_v45  ;;  %v921_v62 = vadd.f32 %v920_v56, %v919_v46  ;;  %v976_v43 = vsel %vm975_vm8, %v966_v44, %v974_v47  ;;  %v1837_v42 = vld [vmem:[%s2253_s15 + $0x10] sm:$0xff]   ;;  %v1840_v56 = vld [vmem:[%s2254_s17 + $0x18] sm:$0xff]  }
 0x36c   :  { %v1060_v63 = vsel %vm973_vm7, %v1053_v49, %v1059_v52  ;;  %v946_v0 = vpack.c.bf16 %v930_v50, %v930_v50  ;;  %v937_v1 = vadd.f32 %v936_v60, %v935_v51  ;;  %v978_v2 = vsel %vm977_vm9, %v967_v53, %v976_v43  ;;  %v1838_v50 = vld [vmem:[%s2253_s15 + $0x8] sm:$0xff]  }
 0x36d   :  { %v1055_v4 = vunpack.c.l.b16 %v1039_v54  ;;  %v945_v5 = vpack.c.bf16 %v916_v61, %v916_v61  ;;  %v922_v7 = vrot.slane %v921_v62, 1  ;;  %v1054_v8 = vunpack.c.l.b16 %v1038_v57  ;;  %v1839_v54 = vld [vmem:[%s2253_s15] sm:$0xff]  }
 0x36e   :  { %v968_v9 = vunpack.c.l.b16 %v944_v58  ;;  %v1040_v10 = vpack.c.bf16 %v909_v59, %v909_v59  ;;  %v970_v13 = vunpack.c.l.b16 %v946_v0  ;;  %v1042_v15 = vpack.c.bf16 %v937_v1, %v937_v1  ;;  %v1841_v58 = vld [vmem:[%s2254_s17 + $0x10] sm:$0xff]  }
 0x36f   :  { %v969_v11 = vunpack.c.l.b16 %v945_v5  ;;  %v923_v48 = vadd.f32 %v922_v7, %v921_v62  ;;  %v1061_v12 = vsel %vm975_vm8, %v1054_v8, %v1060_v63  ;;  %v1848_v32 = vmov 0   ;;  %v1110_v62 = vld [vmem:[%s2255_s12] sm:$0x1] }
 0x370   :  { %v980_v14 = vsel %vm979_vm10, %v968_v9, %v978_v2  ;;  %v1062_v16 = vsel %vm977_vm9, %v1055_v4, %v1061_v12  ;;  %v1056_v19 = vunpack.c.l.b16 %v1040_v10  ;;  %v1058_v24 = vunpack.c.l.b16 %v1042_v15  ;;  %1804 = vset.pattern.permute.xlu0 %v1848_v32  ;;  %v1549_v10 = vld [vmem:[%s2256_s14] ss:$0 sm:$0xff] }
 0x371   :  { %v982_v17 = vsel %vm981_vm11, %v969_v11, %v980_v14  ;;  %v1041_v18 = vpack.c.bf16 %v923_v48, %v923_v48  ;;  %v1117_v52 = vlaneseq  ;;  %v1111_v63 = vunpack.c.l.bf16 %v1110_v62  ;;  %v1842_v14 = vld [vmem:[%s2254_s17 + $0x8] sm:$0xff]   ;;  %v1843_v15 = vld [vmem:[%s2254_s17] sm:$0xff]  }
 0x372   :  { %v984_v20 = vsel %vm983_vm12, %v970_v13, %v982_v17  ;;  %v1063_v25 = vsel %vm979_vm10, %v1056_v19, %v1062_v16  ;;  %v1550_v16 = vld [vmem:[%s2258_s16] ss:$0 sm:$0xff] }
 0x373   :  { %v985_v22 = vpack.c.b16 %v984_v20, %v984_v20  ;;  %v1057_v23 = vunpack.c.l.b16 %v1041_v18  ;;  %v1118_v61 = vshrl.u32 %v1117_v52, 7 }
 0x375   :  { %v1064_v26 = vsel %vm981_vm11, %v1057_v23, %v1063_v25  ;;  %1739 = vmatmul.mubr.msk.bf16.vlgmr.msra.gmra.mxu0 %vm825_vm5, %v985_v22  ;;  %v1119_v43 = vsub.s32 0, %v1118_v61  ;;  %v1129_v0 = vsub.s32 1, %v1118_v61  ;;  %v1844_v22 = vld [vmem:[%s2257_s19 + $0x8] sm:$0xff]   ;;  %v1845_v25 = vld [vmem:[%s2257_s19] sm:$0xff]  }
 0x376   :  { %v1065_v27 = vsel %vm983_vm12, %v1058_v24, %v1064_v26  ;;  %1749 = vmatpush3.bf16.msra.mxu0 %v1828_v21  ;;  %1756 = vmatprep.mubr.msk.bf16.mxu0 %vm1847_vm4, %v1846_v3  ;;  %v28_v26 = vstv %s2259_s20 }
 0x377   :  { %v1066_v29 = vpack.c.b16 %v1065_v27, %v1065_v27  ;;  %1750 = vmatprep.subr.bf16.mxu0 %v1846_v3  ;;  %v1120_v2 = vrot.slane %v1111_v63, %v1119_v43  ;;  %v1130_v4 = vrot.slane %v1111_v63, %v1129_v0  ;;  %29 = vst [vmem:[#allocation3] sm:$0x1] %v28_v26  ;;  %v1559_v27 = vld [vmem:[%s2260_s18] ss:$0 sm:$0xff] }
 0x379   :  { %1745 = vmatmul.mubr.msk.bf16.vlgmr.msra.gmra.mxu1 %vm825_vm5, %v1066_v29 }
 0x37a   :  { %1751 = vmatpush3.bf16.msra.mxu0 %v1829_v28  ;;  %1776 = vmatprep.mubr.msk.bf16.mxu1 %vm1847_vm4, %v1846_v3 }
 0x37b   :  { %1752 = vmatprep.subr.bf16.mxu0 %v1846_v3  ;;  %1761 = vmatpush3.bf16.msra.mxu1 %v1832_v33 }
 0x37c   :  { %1762 = vmatprep.subr.bf16.mxu1 %v1846_v3 }
 0x37e   :  { %1753 = vmatpush3.bf16.msra.mxu0 %v1830_v6  ;;  %v1565_v33 = vld [vmem:[#allocation3] ss:$0 sm:$0xff] }
 0x37f   :  { %1754 = vmatprep.subr.bf16.mxu0 %v1846_v3  ;;  %1763 = vmatpush3.bf16.msra.mxu1 %v1833_v34 }
 0x380   :  { %1764 = vmatprep.subr.bf16.mxu1 %v1846_v3 }
 0x382   :  { %1755 = vmatpush3.bf16.msra.mxu0 %v1831_v30 }
 0x383   :  { %1780 = vmatprep.subr.bf16.mxu0 %v1846_v3  ;;  %1765 = vmatpush3.bf16.msra.mxu1 %v1834_v35 }
 0x384   :  { %1766 = vmatprep.subr.bf16.mxu1 %v1846_v3 }
 0x385   :  { %1757 = vmatmul.mubr.msk.bf16.vlgmr.msra.gmra.mxu0 %vm687_vm3, %v1133_v31 }
 0x386   :  { %1788 = vmatprep.mubr.msk.bf16.mxu0 %vm1847_vm4, %v1846_v3  ;;  %1781 = vmatpush3.bf16.msra.mxu0 %v1840_v56 }
 0x387   :  { %1767 = vmatpush3.bf16.msra.mxu1 %v1835_v36  ;;  %1782 = vmatprep.subr.bf16.mxu0 %v1846_v3 }
 0x388   :  { %1768 = vmatprep.subr.bf16.mxu1 %v1846_v3 }
 0x38a   :  { %1783 = vmatpush3.bf16.msra.mxu0 %v1841_v58 }
 0x38b   :  { %1769 = vmatpush3.bf16.msra.mxu1 %v1836_v38  ;;  %1784 = vmatprep.subr.bf16.mxu0 %v1846_v3 }
 0x38c   :  { %1770 = vmatprep.subr.bf16.mxu1 %v1846_v3 }
 0x38e   :  { %1785 = vmatpush3.bf16.msra.mxu0 %v1842_v14 }
 0x38f   :  { %1771 = vmatpush3.bf16.msra.mxu1 %v1837_v42  ;;  %1786 = vmatprep.subr.bf16.mxu0 %v1846_v3 }
 0x390   :  { %1772 = vmatprep.subr.bf16.mxu1 %v1846_v3 }
 0x392   :  { %1787 = vmatpush3.bf16.msra.mxu0 %v1843_v15 }
 0x393   :  { %1773 = vmatpush3.bf16.msra.mxu1 %v1838_v50  ;;  %1792 = vmatprep.subr.bf16.mxu0 %v1846_v3 }
 0x394   :  { %1774 = vmatprep.subr.bf16.mxu1 %v1846_v3 }
 0x397   :  { %1775 = vmatpush3.bf16.msra.mxu1 %v1839_v54 }
 0x435   :  { %v1029_v39 = vpop.f32.mrf.mxu0 }
 0x436   :  { %v1030_v40 = vadd.f32 %v1540_v37, %v1029_v39 }
 0x437   :  { %v1740_v41 = vpop.f32.mrf.mxu0 }
 0x438   :  { %1114 = vperm.xlu0 %1804, %v1030_v40  }
 0x439   :  { %v1032_v44 = vpop.f32.mrf.mxu0  ;;  %v1104_v45 = vpop.f32.mrf.mxu1 }
 0x43a   :  { %v1105_v46 = vadd.f32 %v1540_v37, %v1104_v45 }
 0x43b   :  { %v1741_v47 = vpop.f32.mrf.mxu0  ;;  %v1746_v49 = vpop.f32.mrf.mxu1 }
 0x43c   :  { %1124 = vperm.xlu0 %1804, %v1105_v46  }
 0x43d   :  { %v1107_v51 = vpop.f32.mrf.mxu1 }
 0x43f   :  { %v1747_v53 = vpop.f32.mrf.mxu1 }
 0x445   :  { %v1203_v55 = vpop.f32.mrf.mxu0 }
 0x447   :  { %v1758_v57 = vpop.f32.mrf.mxu0 }
 0x449   :  { %v1206_v59 = vpop.f32.mrf.mxu0 }
 0x44b   :  { %v1759_v60 = vpop.f32.mrf.mxu0 }
 0x4b3   :  { %v1115_v1 = vpop.permute.xlu0 %1114 }
 0x4b4   :  { %v1121_v7 = vmul.f32 %v1120_v2, %v1115_v1 }
 0x4b7   :  { %v1125_v5 = vpop.permute.xlu0 %1124 }
 0x4b8   :  { %v1131_v8 = vmul.f32 %v1130_v4, %v1125_v5 }
 0x4ba   :  { %v1132_v9 = vadd.f32 %v1131_v8, %v1121_v7 }
 0x4bc   :  { %v1209_v11 = vadd.f32 %v1203_v55, %v1132_v9 }
 0x4be   :  { %v1217_v48 = vadd.f32 %v1549_v10, %v1209_v11 }
 0x4c0   :  { %v1218_v12 = vmax.f32 %v1217_v48, 0.0 }
 0x4c2   :  { %v1219_v13 = vpack.c.bf16 %v1218_v12, %v1218_v12 }
 0x4c4   :  { %1777 = vmatmul.mubr.bf16.vlgmr.msra.gmra.mxu1 %v1219_v13 }
 0x584   :  { %v1325_v17 = vpop.f32.mrf.mxu1 }
 0x585   :  { %v1326_v18 = vadd.f32 %v1550_v16, %v1325_v17 }
 0x586   :  { %v1778_v19 = vpop.f32.mrf.mxu1 }
 0x587   :  { %v1331_v20 = vmax.f32 %v1326_v18, 0.0 }
 0x588   :  { %v1328_v21 = vpop.f32.mrf.mxu1 }
 0x589   :  { %v1332_v23 = vpack.c.bf16 %v1331_v20, %v1331_v20 }
 0x58a   :  { %v1779_v24 = vpop.f32.mrf.mxu1 }
 0x58b   :  { %1789 = vmatmul.mubr.msk.bf16.vlgmr.msra.gmra.mxu0 %vm687_vm3, %v1332_v23 }
 0x58c   :  { %1793 = vmatpush3.bf16.msra.mxu0 %v1844_v22  ;;  %1796 = vmatprep.mubr.msk.bf16.mxu0 %vm1847_vm4, %v1846_v3 }
 0x58d   :  { %1794 = vmatprep.subr.bf16.mxu0 %v1846_v3 }
 0x590   :  { %1795 = vmatpush3.bf16.msra.mxu0 %v1845_v25 }
 0x64b   :  { %v1409_v28 = vpop.f32.mrf.mxu0 }
 0x64c   :  { %v1410_v29 = vadd.f32 %v1559_v27, %v1409_v28 }
 0x64d   :  { %v1790_v6 = vpop.f32.mrf.mxu0 }
 0x64e   :  { %v1415_v30 = vmax.f32 %v1410_v29, 0.0 }
 0x64f   :  { %v1412_v31 = vpop.f32.mrf.mxu0 }
 0x650   :  { %v1416_v3 = vpack.c.bf16 %v1415_v30, %v1415_v30 }
 0x651   :  { %v1791_v32 = vpop.f32.mrf.mxu0 }
 0x652   :  { %1797 = vmatmul.mubr.msk.bf16.vlgmr.msra.gmra.mxu0 %vm310_vm2, %v1416_v3 }
 0x712   :  { %v1477_v34 = vpop.f32.mrf.mxu0 }
 0x713   :  { %v1478_v35 = vadd.f32 %v1565_v33, %v1477_v34 }
 0x714   :  { %v1798_v36 = vpop.f32.mrf.mxu0 }
 0x715   :  { %v1483_v37 = vmax.f32 %v1478_v35, 0.0 }
 0x716   :  { %v1480_v38 = vpop.f32.mrf.mxu0 }
 0x717   :  { %1485 = vst.msk [vmem:[%s2261_s21] sm:$0xff] %vm1484_vm13, %v1483_v37 }
 0x718   :  { %v1799_v39 = vpop.f32.mrf.mxu0 }

</bundles_post_ra>
